<compile_context>
chip_gen: v7x
topology: tpu7x:2x2x1
jax: 0.10.0
libtpu: 0.0.40
codegen_flags: <defaults>
</compile_context>

<pallas_src>
import jax
import jax.numpy as jnp
from jax.experimental import pallas as pl
from jax.experimental.pallas import tpu as pltpu


def _round_up(x, m):
    return (x + m - 1) // m * m


def _vmem_capacity_bytes():
    """Per-core VMEM capacity (generation-aware) with a conservative fallback."""
    try:
        info = pltpu.get_tpu_info()
        cap = int(getattr(info, "vmem_capacity_bytes", 0) or 0)
        if cap > 0:
            return cap
    except Exception:
        pass
    # Unknown generation -> assume the smallest per-core VMEM (v7x, 64 MiB).
    return 64 * 1024 * 1024


def _make_kernel(S, TS, need_spatial_mask):
    def kernel(x_ref, w1_ref, b1_ref, w2_ref, b2_ref, out_ref, acc_ref):
        # x_ref:  (TB, C, TS)  streamed activation chunk (native dtype)
        # w1_ref: (C, F)       backbone linear, pre-transposed, 1/(H*W) folded in
        # b1_ref: (1, F)
        # w2_ref: (F, NCP)     classifier linear, pre-transposed, lane-padded
        # b2_ref: (1, NCP)
        # out_ref:(TB, NCP)    resident across the spatial axis
        # acc_ref:(TB, C) f32  pooled-sum accumulator (VMEM scratch)
        s = pl.program_id(1)

        @pl.when(s == 0)
        def _init():
            acc_ref[...] = jnp.zeros_like(acc_ref)

        # Pooled SUM over this spatial chunk; accumulate in f32 even if the
        # streamed dtype is bf16 (keeps v5e-safe f32 reduction).
        x = x_ref[...].astype(jnp.float32)                     # (TB, C, TS)
        if need_spatial_mask:
            # Ragged last spatial chunk: zero the out-of-range lanes instead of
            # padding x in HBM (saves a full read+write of the activation).
            lane = jax.lax.broadcasted_iota(jnp.int32, (1, 1, TS), 2)
            x = jnp.where(lane + s * TS < S, x, 0.0)
        acc_ref[...] += jnp.sum(x, axis=-1)                    # (TB, C)

        @pl.when(s == pl.num_programs(1) - 1)
        def _finalize():
            pooled = acc_ref[...]                              # scale folded into w1
            feat = jnp.dot(pooled, w1_ref[...],
                           preferred_element_type=jnp.float32) + b1_ref[...]
            feat = jnp.maximum(feat, 0.0)                      # ReLU
            out = jnp.dot(feat, w2_ref[...],
                          preferred_element_type=jnp.float32) + b2_ref[...]
            out_ref[...] = out.astype(out_ref.dtype)           # lane-dense store

    return kernel


def model_with_linear(img, w1, b1, w2, b2, *,
                      x_stream_dtype=None, max_spatial_tile=None):
    """img: (B, C, H, W) NCHW.  Weights are (in_features, out_features), i.e.
    PyTorch W.T.  Returns (B, num_classes) float32.

    x_stream_dtype=None streams the activation in its native dtype (no extra
    HBM pass); pass jnp.bfloat16 to halve streaming traffic when acceptable.
    """
    B, C, H, W = img.shape
    S = H * W
    F = w1.shape[1]
    NC = w2.shape[1]

    # ---- activation stream: keep native dtype (no extra HBM round-trip) ----
    x = img.reshape(B, C, S)
    if x_stream_dtype is not None and x.dtype != jnp.dtype(x_stream_dtype):
        x = x.astype(x_stream_dtype)        # optional bf16 streaming
    itemsize = jnp.dtype(x.dtype).itemsize

    # ---- generation-aware VMEM budgets (v5e/v6e 128 MiB, v7x 64 MiB) -------
    cap = _vmem_capacity_bytes()
    x_dblbuf_budget = cap * 3 // 8          # ~48 MiB on v5e/v6e, ~24 MiB on v7x

    # ---- batch tiling (sublane axis: multiple of 8, or the full dim) -------
    if B <= 8:
        TB = B
    else:
        tb_cap = (B // 8) * 8               # ragged last block handled by Pallas
        TB = min(128, tb_cap)
        if B >= 16:
            # v7x: keep >=2 batch tiles so the "parallel" axis spans both cores.
            TB = min(TB, _round_up(pl.cdiv(B, 2), 8), tb_cap)
        # Shrink (keeping a multiple of 8) if channels are so wide that even a
        # minimal 128-lane spatial chunk would blow the double-buffer budget.
        while TB > 8 and 2 * TB * C * min(S, 128) * itemsize > x_dblbuf_budget:
            TB = max(8, ((TB // 2 + 7) // 8) * 8)
    nb = pl.cdiv(B, TB)

    # ---- spatial tiling (lane axis: multiple of 128, or the full dim) ------
    per_lane_bytes = 2 * TB * C * itemsize  # double-buffered bytes per lane
    ts_budget = max(128, (x_dblbuf_budget // per_lane_bytes) // 128 * 128)
    if max_spatial_tile is not None:
        ts_budget = max(128, (min(ts_budget, int(max_spatial_tile)) // 128) * 128)
    if S <= ts_budget:
        TS = S                              # single chunk, full-dim block
    else:
        TS = ts_budget                      # multiple of 128
    ns = pl.cdiv(S, TS)
    need_spatial_mask = (S % TS) != 0       # ragged last chunk -> mask in kernel

    # ---- zero-cost wrapper math: fold mean scale, pad classifier lanes -----
    NCP = _round_up(max(NC, 128), 128)
    w1s = w1.astype(jnp.float32) / float(S)             # fold 1/(H*W) into w1
    b1r = b1.astype(jnp.float32).reshape(1, F)
    w2p = jnp.pad(w2.astype(jnp.float32), ((0, 0), (0, NCP - NC)))
    b2p = jnp.pad(b2.astype(jnp.float32), ((0, NCP - NC),)).reshape(1, NCP)

    # ---- explicit VMEM limit: never below the kernel's own requirement -----
    x_tile_bytes = TB * C * TS * itemsize
    weight_bytes = 4 * (C * F + F + F * NCP + NCP)
    resident_bytes = 2 * weight_bytes + 2 * 4 * TB * NCP + 4 * TB * C
    required = 2 * x_tile_bytes + resident_bytes + (4 << 20)
    vmem_limit = int(min(max(required, 16 << 20), cap * 85 // 100))

    kernel = _make_kernel(S, TS, need_spatial_mask)

    def build(single_buffer_weights):
        # Constant index_map -> weights never refetch; a single VMEM buffer is
        # enough and frees capacity for larger x tiles (biggest win on v7x).
        wkw = ({"pipeline_mode": pl.Buffered(1)} if single_buffer_weights else {})
        return pl.pallas_call(
            kernel,
            out_shape=jax.ShapeDtypeStruct((B, NCP), jnp.float32),
            grid_spec=pltpu.PrefetchScalarGridSpec(
                num_scalar_prefetch=0,
                grid=(nb, ns),
                in_specs=[
                    pl.BlockSpec((TB, C, TS), lambda b, s: (b, 0, s)),   # x stream
                    pl.BlockSpec((C, F), lambda b, s: (0, 0), **wkw),    # w1 resident
                    pl.BlockSpec((1, F), lambda b, s: (0, 0), **wkw),    # b1 resident
                    pl.BlockSpec((F, NCP), lambda b, s: (0, 0), **wkw),  # w2 resident
                    pl.BlockSpec((1, NCP), lambda b, s: (0, 0), **wkw),  # b2 resident
                ],
                out_specs=pl.BlockSpec((TB, NCP), lambda b, s: (b, 0)),  # resident over s
                scratch_shapes=[pltpu.VMEM((TB, C), jnp.float32)],       # pooled acc
            ),
            compiler_params=pltpu.CompilerParams(
                dimension_semantics=("parallel", "arbitrary"),
                vmem_limit_bytes=vmem_limit,
            ),
        )

    try:
        out = jax.block_until_ready(build(True)(x, w1s, b1r, w2p, b2p))
    except Exception:
        # TODO(synk): fall back to default double-buffering if this jax/Mosaic
        # version rejects pl.Buffered(1) on resident operands.
        out = jax.block_until_ready(build(False)(x, w1s, b1r, w2p, b2p))

    return out[:, :NC] if NCP != NC else out


def _reference(img, w1, b1, w2, b2):
    # Pure-JAX reference for correctness checking.
    B, C, H, W = img.shape
    pooled = jnp.mean(img.reshape(B, C, H * W), axis=-1)
    feat = jnp.maximum(pooled @ w1 + b1, 0.0)
    return feat @ w2 + b2


if __name__ == "__main__":
    key = jax.random.PRNGKey(0)
    k_img, k_w1, k_b1, k_w2, k_b2, k_img2, k_img3 = jax.random.split(key, 7)

    # Small shapes consistent with the module's forward.
    C, inplanes, num_classes = 4, 32, 10

    # Deterministic synthetic parameters, stored as (in_features, out_features).
    w1 = jax.random.normal(k_w1, (C, inplanes), dtype=jnp.float32) * 0.1
    b1 = jax.random.normal(k_b1, (inplanes,), dtype=jnp.float32) * 0.1
    w2 = jax.random.normal(k_w2, (inplanes, num_classes), dtype=jnp.float32) * 0.1
    b2 = jax.random.normal(k_b2, (num_classes,), dtype=jnp.float32) * 0.1

    # 1) Baseline: B=2, 16x16 image.  max_spatial_tile=128 gives grid (1, 2) so
    #    the chunked pooled-sum accumulation (pl.when init/finalize) runs.
    img = jax.random.normal(k_img, (2, C, 16, 16), dtype=jnp.float32)
    out = jax.block_until_ready(
        model_with_linear(img, w1, b1, w2, b2, max_spatial_tile=128))
    ref = _reference(img, w1, b1, w2, b2)
    assert out.shape == (2, num_classes)
    assert jnp.allclose(out, ref, atol=1e-4, rtol=1e-4), "mismatch (baseline)"

    # 2) Ragged spatial extent (15x15 -> S=225, TS=128): exercises the in-kernel
    #    iota mask that replaced the jnp.pad copy of the activation.
    img2 = jax.random.normal(k_img2, (2, C, 15, 15), dtype=jnp.float32)
    out2 = jax.block_until_ready(
        model_with_linear(img2, w1, b1, w2, b2, max_spatial_tile=128))
    ref2 = _reference(img2, w1, b1, w2, b2)
    assert jnp.allclose(out2, ref2, atol=1e-4, rtol=1e-4), "mismatch (ragged S)"

    # 3) Ragged batch (B=10, TB=8): exercises clamped boundary batch blocks
    #    without any batch-padding copy.
    img3 = jax.random.normal(k_img3, (10, C, 8, 8), dtype=jnp.float32)
    out3 = jax.block_until_ready(model_with_linear(img3, w1, b1, w2, b2))
    ref3 = _reference(img3, w1, b1, w2, b2)
    assert out3.shape == (10, num_classes)
    assert jnp.allclose(out3, ref3, atol=1e-4, rtol=1e-4), "mismatch (ragged B)"

    print("KERNEL_OK")
</pallas_src>

<mosaic_0001>
module attributes {stable_mosaic.version = 11 : i64} {
  func.func @kernel(%arg0: i32, %arg1: i32, %arg2: memref<2x4x128xf32, #tpu.memory_space<vmem>>, %arg3: memref<4x32xf32, #tpu.memory_space<vmem>>, %arg4: memref<1x32xf32, #tpu.memory_space<vmem>>, %arg5: memref<32x128xf32, #tpu.memory_space<vmem>>, %arg6: memref<1x128xf32, #tpu.memory_space<vmem>>, %arg7: memref<2x128xf32, #tpu.memory_space<vmem>>, %arg8: memref<2x4xf32, #tpu.memory_space<vmem>>) attributes {dimension_semantics = [#tpu.dimension_semantics<parallel>, #tpu.dimension_semantics<arbitrary>], iteration_bounds = array<i64: 1, 2>, scalar_prefetch = 0 : i64, scratch_operands = 1 : i64, tpu.core_type = #tpu.core_type<tc>, window_params = [{transform_indices = @transform_0, window_bounds = array<i64: 2, 4, 128>}, {pipeline_mode = #tpu.pipeline_mode<synchronous>, transform_indices = @transform_1, window_bounds = array<i64: 4, 32>}, {pipeline_mode = #tpu.pipeline_mode<synchronous>, transform_indices = @transform_2, window_bounds = array<i64: 1, 32>}, {pipeline_mode = #tpu.pipeline_mode<synchronous>, transform_indices = @transform_3, window_bounds = array<i64: 32, 128>}, {pipeline_mode = #tpu.pipeline_mode<synchronous>, transform_indices = @transform_4, window_bounds = array<i64: 1, 128>}, {transform_indices = @transform_5, window_bounds = array<i64: 2, 128>}]} {
    %c0_i32 = arith.constant 0 : i32
    %0 = arith.cmpi eq, %arg1, %c0_i32 : i32
    %1 = arith.extui %0 : i1 to i32
    %c0_i32_0 = arith.constant 0 : i32
    %2 = arith.cmpi ne, %1, %c0_i32_0 : i32
    scf.if %2 {
      %cst_8 = arith.constant 0.000000e+00 : f32
      %11 = vector.broadcast %cst_8 : f32 to vector<2x4xf32>
      %c0_9 = arith.constant 0 : index
      %c0_10 = arith.constant 0 : index
      %12 = vector.load %arg8[%c0_9, %c0_10] : memref<2x4xf32, #tpu.memory_space<vmem>>, vector<2x4xf32>
      tpu.vector_store %arg8[%c0_9, %c0_10], %11 {strides = array<i32>} : memref<2x4xf32, #tpu.memory_space<vmem>>, vector<2x4xf32>,
    } else {
    }
    %c0 = arith.constant 0 : index
    %c0_1 = arith.constant 0 : index
    %c0_2 = arith.constant 0 : index
    %3 = vector.load %arg2[%c0, %c0_1, %c0_2] : memref<2x4x128xf32, #tpu.memory_space<vmem>>, vector<2x4x128xf32>
    %c0_3 = arith.constant 0 : index
    %c0_4 = arith.constant 0 : index
    %4 = vector.load %arg8[%c0_3, %c0_4] : memref<2x4xf32, #tpu.memory_space<vmem>>, vector<2x4xf32>
    %cst = arith.constant dense<0.000000e+00> : vector<2x4xf32>
    %5 = vector.multi_reduction <add>, %3, %cst [2] : vector<2x4x128xf32> to vector<2x4xf32>
    %6 = arith.addf %4, %5 : vector<2x4xf32>
    %c0_5 = arith.constant 0 : index
    %c0_6 = arith.constant 0 : index
    %7 = vector.load %arg8[%c0_5, %c0_6] : memref<2x4xf32, #tpu.memory_space<vmem>>, vector<2x4xf32>
    tpu.vector_store %arg8[%c0_5, %c0_6], %6 {strides = array<i32>} : memref<2x4xf32, #tpu.memory_space<vmem>>, vector<2x4xf32>,
    %c1_i32 = arith.constant 1 : i32
    %8 = arith.cmpi eq, %arg1, %c1_i32 : i32
    %9 = arith.extui %8 : i1 to i32
    %c0_i32_7 = arith.constant 0 : i32
    %10 = arith.cmpi ne, %9, %c0_i32_7 : i32
    scf.if %10 {
      %c0_8 = arith.constant 0 : index
      %c0_9 = arith.constant 0 : index
      %11 = vector.load %arg8[%c0_8, %c0_9] : memref<2x4xf32, #tpu.memory_space<vmem>>, vector<2x4xf32>
      %c0_10 = arith.constant 0 : index
      %c0_11 = arith.constant 0 : index
      %12 = vector.load %arg3[%c0_10, %c0_11] : memref<4x32xf32, #tpu.memory_space<vmem>>, vector<4x32xf32>
      %cst_12 = arith.constant dense<0.000000e+00> : vector<2x32xf32>
      %13 = tpu.matmul %11, %12, %cst_12 {dimension_numbers = #tpu.dot_dimension_numbers<[1], [0], [0], [1], [0, 0, 1, 1], [], []>} : vector<2x4xf32>, vector<4x32xf32>, vector<2x32xf32> -> vector<2x32xf32>
      %c0_13 = arith.constant 0 : index
      %c0_14 = arith.constant 0 : index
      %14 = vector.load %arg4[%c0_13, %c0_14] : memref<1x32xf32, #tpu.memory_space<vmem>>, vector<1x32xf32>
      %15 = vector.broadcast %14 : vector<1x32xf32> to vector<2x32xf32>
      %16 = arith.addf %13, %15 : vector<2x32xf32>
      %cst_15 = arith.constant 0.000000e+00 : f32
      %17 = vector.broadcast %cst_15 : f32 to vector<2x32xf32>
      %18 = arith.maximumf %16, %17 : vector<2x32xf32>
      %c0_16 = arith.constant 0 : index
      %c0_17 = arith.constant 0 : index
      %19 = vector.load %arg5[%c0_16, %c0_17] : memref<32x128xf32, #tpu.memory_space<vmem>>, vector<32x128xf32>
      %cst_18 = arith.constant dense<0.000000e+00> : vector<2x128xf32>
      %20 = tpu.matmul %18, %19, %cst_18 {dimension_numbers = #tpu.dot_dimension_numbers<[1], [0], [0], [1], [0, 0, 1, 1], [], []>} : vector<2x32xf32>, vector<32x128xf32>, vector<2x128xf32> -> vector<2x128xf32>
      %c0_19 = arith.constant 0 : index
      %c0_20 = arith.constant 0 : index
      %21 = vector.load %arg6[%c0_19, %c0_20] : memref<1x128xf32, #tpu.memory_space<vmem>>, vector<1x128xf32>
      %22 = vector.broadcast %21 : vector<1x128xf32> to vector<2x128xf32>
      %23 = arith.addf %20, %22 : vector<2x128xf32>
      %c0_21 = arith.constant 0 : index
      %c0_22 = arith.constant 0 : index
      %24 = vector.load %arg7[%c0_21, %c0_22] : memref<2x128xf32, #tpu.memory_space<vmem>>, vector<2x128xf32>
      tpu.vector_store %arg7[%c0_21, %c0_22], %23 {strides = array<i32>} : memref<2x128xf32, #tpu.memory_space<vmem>>, vector<2x128xf32>,
    } else {
    }
    return
  }
  func.func @transform_0(%arg0: i32, %arg1: i32) -> (i32, i32, i32) {
    %c0_i32 = arith.constant 0 : i32
    %c0_i32_0 = arith.constant 0 : i32
    return %arg0, %c0_i32, %arg1 : i32, i32, i32
  }
  func.func @transform_1(%arg0: i32, %arg1: i32) -> (i32, i32) {
    %c0_i32 = arith.constant 0 : i32
    %c0_i32_0 = arith.constant 0 : i32
    %c0_i32_1 = arith.constant 0 : i32
    return %c0_i32, %c0_i32_0 : i32, i32
  }
  func.func @transform_2(%arg0: i32, %arg1: i32) -> (i32, i32) {
    %c0_i32 = arith.constant 0 : i32
    %c0_i32_0 = arith.constant 0 : i32
    %c0_i32_1 = arith.constant 0 : i32
    return %c0_i32, %c0_i32_0 : i32, i32
  }
  func.func @transform_3(%arg0: i32, %arg1: i32) -> (i32, i32) {
    %c0_i32 = arith.constant 0 : i32
    %c0_i32_0 = arith.constant 0 : i32
    %c0_i32_1 = arith.constant 0 : i32
    return %c0_i32, %c0_i32_0 : i32, i32
  }
  func.func @transform_4(%arg0: i32, %arg1: i32) -> (i32, i32) {
    %c0_i32 = arith.constant 0 : i32
    %c0_i32_0 = arith.constant 0 : i32
    %c0_i32_1 = arith.constant 0 : i32
    return %c0_i32, %c0_i32_0 : i32, i32
  }
  func.func @transform_5(%arg0: i32, %arg1: i32) -> (i32, i32) {
    %c0_i32 = arith.constant 0 : i32
    %c0_i32_0 = arith.constant 0 : i32
    return %arg0, %c0_i32 : i32, i32
  }
}

module attributes {stable_mosaic.version = 11 : i64} {
  func.func @kernel(%arg0: i32, %arg1: i32, %arg2: memref<2x4x128xf32, #tpu.memory_space<vmem>>, %arg3: memref<4x32xf32, #tpu.memory_space<vmem>>, %arg4: memref<1x32xf32, #tpu.memory_space<vmem>>, %arg5: memref<32x128xf32, #tpu.memory_space<vmem>>, %arg6: memref<1x128xf32, #tpu.memory_space<vmem>>, %arg7: memref<2x128xf32, #tpu.memory_space<vmem>>, %arg8: memref<2x4xf32, #tpu.memory_space<vmem>>) attributes {dimension_semantics = [#tpu.dimension_semantics<parallel>, #tpu.dimension_semantics<arbitrary>], iteration_bounds = array<i64: 1, 2>, scalar_prefetch = 0 : i64, scratch_operands = 1 : i64, tpu.core_type = #tpu.core_type<tc>, window_params = [{transform_indices = @transform_0, window_bounds = array<i64: 2, 4, 128>}, {pipeline_mode = #tpu.pipeline_mode<synchronous>, transform_indices = @transform_1, window_bounds = array<i64: 4, 32>}, {pipeline_mode = #tpu.pipeline_mode<synchronous>, transform_indices = @transform_2, window_bounds = array<i64: 1, 32>}, {pipeline_mode = #tpu.pipeline_mode<synchronous>, transform_indices = @transform_3, window_bounds = array<i64: 32, 128>}, {pipeline_mode = #tpu.pipeline_mode<synchronous>, transform_indices = @transform_4, window_bounds = array<i64: 1, 128>}, {transform_indices = @transform_5, window_bounds = array<i64: 2, 128>}]} {
    %c0_i32 = arith.constant 0 : i32
    %0 = arith.cmpi eq, %arg1, %c0_i32 : i32
    %1 = arith.extui %0 : i1 to i32
    %c0_i32_0 = arith.constant 0 : i32
    %2 = arith.cmpi ne, %1, %c0_i32_0 : i32
    scf.if %2 {
      %cst_8 = arith.constant 0.000000e+00 : f32
      %11 = vector.broadcast %cst_8 : f32 to vector<2x4xf32>
      %c0_9 = arith.constant 0 : index
      %c0_10 = arith.constant 0 : index
      %12 = vector.load %arg8[%c0_9, %c0_10] : memref<2x4xf32, #tpu.memory_space<vmem>>, vector<2x4xf32>
      tpu.vector_store %arg8[%c0_9, %c0_10], %11 {strides = array<i32>} : memref<2x4xf32, #tpu.memory_space<vmem>>, vector<2x4xf32>,
    } else {
    }
    %c0 = arith.constant 0 : index
    %c0_1 = arith.constant 0 : index
    %c0_2 = arith.constant 0 : index
    %3 = vector.load %arg2[%c0, %c0_1, %c0_2] : memref<2x4x128xf32, #tpu.memory_space<vmem>>, vector<2x4x128xf32>
    %c0_3 = arith.constant 0 : index
    %c0_4 = arith.constant 0 : index
    %4 = vector.load %arg8[%c0_3, %c0_4] : memref<2x4xf32, #tpu.memory_space<vmem>>, vector<2x4xf32>
    %cst = arith.constant dense<0.000000e+00> : vector<2x4xf32>
    %5 = vector.multi_reduction <add>, %3, %cst [2] : vector<2x4x128xf32> to vector<2x4xf32>
    %6 = arith.addf %4, %5 : vector<2x4xf32>
    %c0_5 = arith.constant 0 : index
    %c0_6 = arith.constant 0 : index
    %7 = vector.load %arg8[%c0_5, %c0_6] : memref<2x4xf32, #tpu.memory_space<vmem>>, vector<2x4xf32>
    tpu.vector_store %arg8[%c0_5, %c0_6], %6 {strides = array<i32>} : memref<2x4xf32, #tpu.memory_space<vmem>>, vector<2x4xf32>,
    %c1_i32 = arith.constant 1 : i32
    %8 = arith.cmpi eq, %arg1, %c1_i32 : i32
    %9 = arith.extui %8 : i1 to i32
    %c0_i32_7 = arith.constant 0 : i32
    %10 = arith.cmpi ne, %9, %c0_i32_7 : i32
    scf.if %10 {
      %c0_8 = arith.constant 0 : index
      %c0_9 = arith.constant 0 : index
      %11 = vector.load %arg8[%c0_8, %c0_9] : memref<2x4xf32, #tpu.memory_space<vmem>>, vector<2x4xf32>
      %c0_10 = arith.constant 0 : index
      %c0_11 = arith.constant 0 : index
      %12 = vector.load %arg3[%c0_10, %c0_11] : memref<4x32xf32, #tpu.memory_space<vmem>>, vector<4x32xf32>
      %cst_12 = arith.constant dense<0.000000e+00> : vector<2x32xf32>
      %13 = tpu.matmul %11, %12, %cst_12 {dimension_numbers = #tpu.dot_dimension_numbers<[1], [0], [0], [1], [0, 0, 1, 1], [], []>} : vector<2x4xf32>, vector<4x32xf32>, vector<2x32xf32> -> vector<2x32xf32>
      %c0_13 = arith.constant 0 : index
      %c0_14 = arith.constant 0 : index
      %14 = vector.load %arg4[%c0_13, %c0_14] : memref<1x32xf32, #tpu.memory_space<vmem>>, vector<1x32xf32>
      %15 = vector.broadcast %14 : vector<1x32xf32> to vector<2x32xf32>
      %16 = arith.addf %13, %15 : vector<2x32xf32>
      %cst_15 = arith.constant 0.000000e+00 : f32
      %17 = vector.broadcast %cst_15 : f32 to vector<2x32xf32>
      %18 = arith.maximumf %16, %17 : vector<2x32xf32>
      %c0_16 = arith.constant 0 : index
      %c0_17 = arith.constant 0 : index
      %19 = vector.load %arg5[%c0_16, %c0_17] : memref<32x128xf32, #tpu.memory_space<vmem>>, vector<32x128xf32>
      %cst_18 = arith.constant dense<0.000000e+00> : vector<2x128xf32>
      %20 = tpu.matmul %18, %19, %cst_18 {dimension_numbers = #tpu.dot_dimension_numbers<[1], [0], [0], [1], [0, 0, 1, 1], [], []>} : vector<2x32xf32>, vector<32x128xf32>, vector<2x128xf32> -> vector<2x128xf32>
      %c0_19 = arith.constant 0 : index
      %c0_20 = arith.constant 0 : index
      %21 = vector.load %arg6[%c0_19, %c0_20] : memref<1x128xf32, #tpu.memory_space<vmem>>, vector<1x128xf32>
      %22 = vector.broadcast %21 : vector<1x128xf32> to vector<2x128xf32>
      %23 = arith.addf %20, %22 : vector<2x128xf32>
      %c0_21 = arith.constant 0 : index
      %c0_22 = arith.constant 0 : index
      %24 = vector.load %arg7[%c0_21, %c0_22] : memref<2x128xf32, #tpu.memory_space<vmem>>, vector<2x128xf32>
      tpu.vector_store %arg7[%c0_21, %c0_22], %23 {strides = array<i32>} : memref<2x128xf32, #tpu.memory_space<vmem>>, vector<2x128xf32>,
    } else {
    }
    return
  }
  func.func @transform_0(%arg0: i32, %arg1: i32) -> (i32, i32, i32) {
    %c0_i32 = arith.constant 0 : i32
    %c0_i32_0 = arith.constant 0 : i32
    return %arg0, %c0_i32, %arg1 : i32, i32, i32
  }
  func.func @transform_1(%arg0: i32, %arg1: i32) -> (i32, i32) {
    %c0_i32 = arith.constant 0 : i32
    %c0_i32_0 = arith.constant 0 : i32
    %c0_i32_1 = arith.constant 0 : i32
    return %c0_i32, %c0_i32_0 : i32, i32
  }
  func.func @transform_2(%arg0: i32, %arg1: i32) -> (i32, i32) {
    %c0_i32 = arith.constant 0 : i32
    %c0_i32_0 = arith.constant 0 : i32
    %c0_i32_1 = arith.constant 0 : i32
    return %c0_i32, %c0_i32_0 : i32, i32
  }
  func.func @transform_3(%arg0: i32, %arg1: i32) -> (i32, i32) {
    %c0_i32 = arith.constant 0 : i32
    %c0_i32_0 = arith.constant 0 : i32
    %c0_i32_1 = arith.constant 0 : i32
    return %c0_i32, %c0_i32_0 : i32, i32
  }
  func.func @transform_4(%arg0: i32, %arg1: i32) -> (i32, i32) {
    %c0_i32 = arith.constant 0 : i32
    %c0_i32_0 = arith.constant 0 : i32
    %c0_i32_1 = arith.constant 0 : i32
    return %c0_i32, %c0_i32_0 : i32, i32
  }
  func.func @transform_5(%arg0: i32, %arg1: i32) -> (i32, i32) {
    %c0_i32 = arith.constant 0 : i32
    %c0_i32_0 = arith.constant 0 : i32
    return %arg0, %c0_i32 : i32, i32
  }
}

</mosaic_0001>

<bundles_post_ra>
// kernel: tpu_custom_call.1
= control target key start
LH: loop header
LB: loop body
LE: loop exit
PB: predicated region body
PF: predicated region fallthrough
CT: control target
= control target key end

     0   :  { %10 = vsyncpa [#allocation4], 0  ;;  %s1163_s0 = inlined_call_operand.hbm [shape: f32[2,4,256], index: 0, kind: input, shape index: {}]   ;;  %s1164_s1 = inlined_call_operand.hbm [shape: f32[4,32], index: 1, kind: input, shape index: {}]   ;;  %s1165_s2 = inlined_call_operand.vmem [shape: f32[1,32], index: 2, kind: input, shape index: {}]   ;;  %s1166_s3 = inlined_call_operand.hbm [shape: f32[32,128], index: 3, kind: input, shape index: {}]   ;;  %s1167_s4 = inlined_call_operand.vmem [shape: f32[1,128], index: 4, kind: input, shape index: {}]   ;;  %s1168_s5 = inlined_call_operand.hbm [shape: f32[2,128], index: 5, kind: output, shape index: {}]  }
   0x1   :  { %12 = vsyncpa [#allocation4 + $0x1], 0 }
   0x2   :  { %13 = vsyncpa [#allocation7], 0 }
   0x3   :  { %14 = vsyncpa [#allocation5], 0  ;;  %s938_s18 = smov 0   ;;  %s940_s19 = smov 0  }
   0x4   :  { %s942_s20 = smov 0   ;;  %s944_s21 = smov 0  }
   0x5   :  { %s946_s22 = smov 0   ;;  %s948_s23 = smov 0  }
   0x6 LB: > { %s582_s24 = sadd.s32 4294967295, %s894_s23   ;;  %s41_s25 = sadd.s32 1, %s882_s20  ;;  %s894_s23 = sphi %s948_s23, %s20_s23   ;;  %s890_s22 = sphi %s946_s22, %s1188_s22   ;;  %s886_s21 = sphi %s944_s21, %s1187_s21   ;;  %s882_s20 = sphi %s942_s20, %s1186_s20   ;;  %s878_s19 = sphi %s940_s19, %s1185_s19   ;;  %s874_s18 = sphi %s938_s18, %s1184_s18  }
   0x7   : > { %p48_p0 = scmp.ne.s32.totalorder %s882_s20, %s878_s19  ;;  %p49_p1 = scmp.eq.s32.totalorder %s894_s23, 0 }
   0x8   : > { %p54_p2 = scmp.ne.s32.totalorder %s878_s19, %s874_s18  ;;  %p974_p3 = scmp.eq.s32.totalorder %s582_s24, 0 }
   0x9   : > { %p50_p4 = por %p49_p1, %p48_p0  ;;  %p583_p5 = scmp.ge.s32.totalorder %s894_s23, 1 }
   0xa   : > { %s1174_s26 = scalar_select %p974_p3, 1, 0 }
   0xb   : > { %p981_p6 = por %p974_p3, %p54_p2  ;;  %p175_p7 = scmp.lt.s32.totalorder %s894_s23, 3 }
   0xc   : > { %s896_s29 = smov [#allocation6]   ;;  %p660_p10 = scmp.lt.s32.totalorder %s894_s23, 2 }
   0xd   : > { %s1175_s27 = scalar_select %p981_p6, 1, 0 }
   0xe   : > { %p986_p8 = pnand %p583_p5, %p175_p7  ;;  %s188_s30 = sshll.u32 %s896_s29, 4  ;;  %s189_s30 = int_to_ptr.vmem [resolvable:$true] %s188_s30 }
   0xf   : > { %p999_p12 = pnand %p660_p10, %p50_p4  ;;  %s897_s8 = smov [#allocation8]  }
  0x10   : > { %s1176_s28 = scalar_select %p986_p8, 1, 0 }
  0x11   : > { %p647_p9 = pneg %p986_p8  ;;  %s201_s9 = sshll.u32 %s897_s8, 4  ;;  %s202_s9 = int_to_ptr.vmem [resolvable:$true] %s201_s9 }
  0x12   : > { %s1178_s7 = scalar_select %p999_p12, 1, 0 }
  0x13   : > { %p995_p11 = pnand %p647_p9, %p974_p3  ;;  %s724_s12 = scalar_lea.hbm %s1164_s1, 64 }
  0x14   : > { %p725_p13 = scmp.ne.s32.totalorder %s1164_s1, %s724_s12  ;;  %p731_p4 = scmp.lt.u32.totalorder %s724_s12, %s1164_s1 }
  0x15   : > { %p726_p0 = pneg %p995_p11 }
  0x17   : > { %p727_p1 = pnand %p726_p0, %p725_p13 }
  0x19   : > { %p728_p2 = pneg %p727_p1 }
  0x1b   : > { %p733_p5 = pnand %p731_p4, %p728_p2 }
  0x1d   : > { %736 = shalt.err (!%p733_p5)
}
  0x1e   : > { %s737_s17 = scalar_lea.vmem %s189_s30, 64  ;;  %p745_p3 = scmp.lt.s32.totalorder %s189_s30, %s189_s30 }
  0x1f   : > { %p738_p7 = scmp.ne.s32.totalorder %s189_s30, %s737_s17  ;;  %p746_p6 = scmp.lt.s32.totalorder %s737_s17, %s737_s17 }
  0x21   : > { %p740_p9 = pnand %p738_p7, %p726_p0  ;;  %p747_p8 = por %p746_p6, %p745_p3 }
  0x23   : > { %p741_p10 = pneg %p740_p9 }
  0x25   : > { %p748_p12 = pnand %p747_p8, %p741_p10 }
  0x27   : > { %751 = shalt.err (!%p748_p12)
}
  0x28   : > { %650 = dma.hbm_to_vmem [thread:$0]  (!%p995_p11), %s1164_s1, 64, %s189_s30, [#allocation7]  }
  0x29   : > { %s752_s11 = scalar_lea.hbm %s1166_s3, 512 }
  0x2a   : > { %p753_p13 = scmp.ne.s32.totalorder %s1166_s3, %s752_s11  ;;  %p759_p8 = scmp.lt.u32.totalorder %s752_s11, %s1166_s3 }
  0x2c   : > { %p755_p3 = pnand %p753_p13, %p726_p0 }
  0x2e   : > { %p756_p6 = pneg %p755_p3 }
  0x30   : > { %p761_p12 = pnand %p759_p8, %p756_p6 }
  0x32   : > { %764 = shalt.err (!%p761_p12)
}
  0x33   : > { %s765_s30 = scalar_lea.vmem %s202_s9, 512  ;;  %p773_p5 = scmp.lt.s32.totalorder %s202_s9, %s202_s9 }
  0x34   : > { %p766_p1 = scmp.ne.s32.totalorder %s202_s9, %s765_s30  ;;  %p774_p7 = scmp.lt.s32.totalorder %s765_s30, %s765_s30 }
  0x36   : > { %p768_p2 = pnand %p766_p1, %p726_p0  ;;  %p775_p9 = por %p774_p7, %p773_p5 }
  0x38   : > { %p769_p4 = pneg %p768_p2 }
  0x3a   : > { %p776_p10 = pnand %p775_p9, %p769_p4 }
  0x3c   : > { %779 = shalt.err (!%p776_p10)
}
  0x3d   : > { %s898_s16 = smov 128   ;;  %s899_s17 = smov 8  }
  0x3e   : > { %653 = dma.hbm_to_vmem [thread:$0]  (!%p995_p11), %s1166_s3, 512, %s202_s9, [#allocation7], %s898_s16, %s898_s16, %s899_s17  }
  0x3f   : > { %s218_s8 = sand.u32 1, %s882_s20   ;;  %s29_s10 = sadd.s32 1, %s890_s22 }
  0x40   : > { %p30_p0 = scmp.ge.s32.totalorder %s29_s10, 2  ;;  %s587_s11 = sshll.u32 %s218_s8, 3 }
  0x41   : > { %s588_s12 = sshll.u32 %s890_s22, 6  ;;  %s222_s15 = scalar_lea.vmem [#allocation3], %s587_s11 }
  0x42   : > { %s1190_s10 = smov (%p30_p0, %s29_s10), 0  ;;  %s1055_s6 = scalar_lea.hbm %s1163_s0, %s588_s12 }
  0x43   : > { %s231_s9 = sshll.u32 %s222_s15, 4  ;;  %s37_s30 = ssub.s32 %s890_s22, %s1190_s10  ;;  %s1059_s9 = int_to_ptr.vmem [resolvable:$true] %s231_s9 }
  0x44   : > { %p39_p11 = scmp.eq.s32.totalorder %s37_s30, 0  ;;  %s1066_s18 = scalar_lea.sflag [#allocation4], %s218_s8 }
  0x45   : > { %s780_s29 = scalar_lea.hbm %s1055_s6, 128  ;;  %p1179_p3 = scmp.ne.s32.totalorder %s1178_s7, 0 }
  0x46   : > { %s1064_s17 = scalar_select %p39_p11, %s882_s20, %s41_s25  }
  0x47   : > { %p781_p13 = scmp.ne.s32.totalorder %s1055_s6, %s780_s29  ;;  %p782_p6 = pneg %p1179_p3 }
  0x48   : > { %s785_s13 = scalar_lea.hbm %s1163_s0, 256  ;;  %p786_p1 = scmp.lt.u32.totalorder %s1055_s6, %s1163_s0 }
  0x49   : > { %p783_p8 = pnand %p782_p6, %p781_p13  ;;  %p787_p2 = scmp.lt.u32.totalorder %s785_s13, %s780_s29 }
  0x4a   : > { %p789_p5 = scmp.lt.u32.totalorder %s780_s29, %s1055_s6 }
  0x4b   : > { %p784_p12 = pneg %p783_p8  ;;  %p788_p4 = por %p787_p2, %p786_p1 }
  0x4d   : > { %p790_p7 = por %p789_p5, %p788_p4 }
  0x4f   : > { %p791_p9 = pnand %p790_p7, %p784_p12 }
  0x51   : > { %794 = shalt.err (!%p791_p9)
}
  0x52   : > { %s795_s25 = scalar_lea.vmem %s1059_s9, 128  ;;  %s900_s8 = smov [#allocation3]  }
  0x53   : > { %p796_p10 = scmp.ne.s32.totalorder %s1059_s9, %s795_s25  ;;  %s800_s30 = sshll.u32 %s900_s8, 4  ;;  %s801_s30 = int_to_ptr.vmem [resolvable:$false] %s800_s30 }
  0x54   : > { %s802_s11 = scalar_lea.vmem %s801_s30, 256  ;;  %p803_p13 = scmp.lt.s32.totalorder %s1059_s9, %s801_s30 }
  0x55   : > { %p798_p0 = pnand %p796_p10, %p782_p6  ;;  %p804_p8 = scmp.lt.s32.totalorder %s802_s11, %s795_s25 }
  0x57   : > { %p799_p11 = pneg %p798_p0  ;;  %p805_p1 = por %p804_p8, %p803_p13 }
  0x59   : > { %p806_p2 = pnand %p805_p1, %p799_p11 }
  0x5b   : > { %809 = shalt.err (!%p806_p2)
}
  0x5c   : > { %s901_s29 = smov 64   ;;  %s902_s12 = smov 4  }
  0x5d   : > { %657 = dma.hbm_to_vmem [thread:$0]  (!%p1179_p3), %s1055_s6, 128, %s1059_s9, %s1066_s18, %s898_s16, %s901_s29, %s902_s12  }
  0x5e   : > { %p1180_p6 = scmp.ne.s32.totalorder %s1176_s28, 0 }
  0x5f   : > { %s245_s13 = sand.u32 (!%p1180_p6), 1, %s878_s19   ;;  %p1181_p12 = scmp.ne.s32.totalorder (!%p1180_p6), %s1175_s27, 0 }
  0x60   : > { %243 = sbr.rel (%p1180_p6) target bundleno = 733 (0x2dd), region = 40  ;;  %s590_s14 = sshll.u32 (!%p1180_p6), %s245_s13, 3 }
  0x61   : > { %s246_s15 = scalar_lea.sflag (!%p1180_p6), [#allocation4], %s245_s13  ;;  %s249_s25 = scalar_lea.vmem (!%p1180_p6), [#allocation3], %s590_s14 }
  0x67   : > { %861 = dma.done.wait (%p1181_p12), %s246_s15, 128  }
  0x68   : > { %863 = vsyncadd (%p1181_p12), %s246_s15, 4294967168  ;;  %p1182_p4 = scmp.ne.s32.totalorder %s1174_s26, 0 }
  0x6a   : > { %865 = dma.done.wait (%p1182_p4), [#allocation7], 576  }
  0x6b   : > { %867 = vsyncadd (%p1182_p4), [#allocation7], 4294966720  ;;  %p593_p3 = scmp.ne.s32.totalorder %s886_s21, 0 }
  0x6c   : > { %vm284_vm0 = vcmask (!%p593_p3), 25600   ;;  %v903_v0 = vmov (!%p593_p3), 0.0  }
  0x6d   : > { %283 = sbr.rel (%p593_p3) target bundleno = 116 (0x74), region = 56  ;;  %285 = vst.msk [vmem:[#allocation2] sm:$0x3] (!%p593_p3), %vm284_vm0, %v903_v0 }
  0x74 PF: > { %v286_v1 = vld [vmem:[%s249_s25] sm:$0xf]  ;;  %vm289_vm1 = vcmask 1043456   ;;  %v287_v2 = vld [vmem:[%s249_s25 + $0x4] sm:$0xf]  ;;  %v298_v5 = vlaneseq  ;;  %vm308_vm2 = vcmask 1041409  }
  0x75   : > { %v290_v3 = vsel %vm289_vm1, %v286_v1, 0.0  ;;  %v293_v4 = vsel %vm289_vm1, %v287_v2, 0.0  ;;  %v288_v12 = vld [vmem:[#allocation2] sm:$0x3]  ;;  %vm312_vm3 = vcmask 25600   ;;  %p594_p5 = scmp.ne.s32.totalorder %s886_s21, 1 }
  0x76   : > { %291 = vadd.xlane.f32.xlu0 %v290_v3  ;;  %v299_v6 = vand.u32 127, %v298_v5  ;;  %v301_v7 = vshrl.u32 %v298_v5, 7  ;;  %v319_v16 = vld [vmem:[#allocation6] sm:$0xf] (!%p594_p5)  ;;  %v904_v18 = vmov (!%p594_p5), 0.0   ;;  %vm905_vm4 = vmmov (!%p594_p5), 0  }
  0x77   : > { %611 = vmatprep.subr.mxu0 (!%p594_p5), %v904_v18  ;;  %613 = vmatprep.mubr.msk.f32.mxu0 (!%p594_p5), %vm905_vm4, %v904_v18  ;;  %vm327_vm5 = vcmask (!%p594_p5), 31744   ;;  %v405_v19 = vld [vmem:[#allocation8] sm:$0xff] (!%p594_p5)  ;;  %v406_v20 = vld [vmem:[#allocation8 + $0x8] sm:$0xff] (!%p594_p5)  ;;  %v906_v21 = vmov (!%p594_p5), 0.0|0.0   ;;  %v407_v23 = vld [vmem:[#allocation8 + $0x10] sm:$0xff] (!%p594_p5)  ;;  %vm416_vm6 = vcmask (!%p594_p5), 261120  }
  0x78   : > { %v302_v9 = vsub.s32 %v299_v6, %v301_v7  ;;  %612 = vmatpush3.msk.msra.mxu0 (!%p594_p5), %vm289_vm1, %v319_v16  ;;  %627 = vmatprep.subr.bf16.mxu1 (!%p594_p5), %v906_v21  ;;  %v628_v22 = vpack.c.bf16 (!%p594_p5), %v406_v20, %v405_v19  ;;  %v408_v24 = vld [vmem:[#allocation8 + $0x18] sm:$0xff] (!%p594_p5)  ;;  %v595_v26 = vld [vmem:[%s1165_s2] ss:$0 sm:$0xff] (!%p594_p5) }
  0x79   : > { %624 = vmatprep.mubr.msk.f32.mxu1 (!%p594_p5), %vm905_vm4, %v904_v18  ;;  %v631_v25 = vpack.c.bf16 (!%p594_p5), %v408_v24, %v407_v23  ;;  %v598_v31 = vld [vmem:[%s1167_s4] ss:$0 sm:$0xff] (!%p594_p5) }
  0x7a   : > { %294 = vadd.xlane.f32.xlu0 %v293_v4  ;;  %629 = vmatpush3.bf16.msra.mxu1 (!%p594_p5), %v628_v22 }
  0x7b   : > { %630 = vmatprep.subr.bf16.mxu1 (!%p594_p5), %v906_v21 }
  0x7e   : > { %632 = vmatpush3.bf16.msra.mxu1 (!%p594_p5), %v631_v25 }
 0x103   : > { %v292_v8 = vpop.xlane.xlu0 %291 }
 0x104   : > { %v303_v11 = vrot.slane %v292_v8, %v302_v9 }
 0x107   : > { %v295_v10 = vpop.xlane.xlu0 %294  ;;  %317 = sbr.rel (%p594_p5) target bundleno = 708 (0x2c4), region = 60 }
 0x108   : > { %v307_v13 = vrot.slane %v295_v10, %v302_v9 }
 0x10a   : > { %v309_v14 = vsel %vm308_vm2, %v307_v13, %v303_v11 }
 0x10b   : > { %v311_v15 = vadd.f32 %v309_v14, %v288_v12 }
 0x10d   : > { %313 = vst.msk [vmem:[#allocation2] sm:$0x3] %vm312_vm3, %v311_v15 }
 0x114   : > { %v318_v17 = vld [vmem:[#allocation2] sm:$0x3] }
 0x115   : > { %614 = vmatmul.mubr.msk.f32.vlgmr.msra.gmra.mrb[0].mxu0 %vm327_vm5, %v318_v17 }
 0x1e8   : > { %v400_v27 = vpop.f32.mrb[0].mxu0 }
 0x1e9   : > { %v401_v28 = vadd.f32 %v595_v26, %v400_v27  ;;  %v615_v29 = vpop.f32.mrb[1].mxu0 }
 0x1eb   : > { %v404_v30 = vmax.f32 %v401_v28, 0.0 }
 0x1ed   : > { %625 = vmatmul.mubr.msk.f32.vlgmr.msra.gmra.mrb[0].mxu1 %vm416_vm6, %v404_v30 }
 0x2c0   : > { %v486_v32 = vpop.f32.mrb[0].mxu1 }
 0x2c1   : > { %v487_v33 = vadd.f32 %v598_v31, %v486_v32  ;;  %v626_v34 = vpop.f32.mrb[1].mxu1 }
 0x2c3   : > { %490 = vst [vmem:[#allocation9] sm:$0x3] %v487_v33 }
 0x2c4 PF: > { %p1119_p7 = scmp.eq.s32.totalorder %s582_s24, 1  ;;  %s907_s16 = smov [#allocation9]  }
 0x2c5   : > { %s500_s6 = sshll.u32 %s907_s16, 4  ;;  %s501_s6 = int_to_ptr.vmem [resolvable:$true] %s500_s6 }
 0x2c6   : > { %s810_s9 = scalar_lea.vmem %s501_s6, 32  ;;  %p817_p11 = scmp.lt.s32.totalorder %s501_s6, %s501_s6 }
 0x2c7   : > { %p811_p9 = scmp.ne.s32.totalorder %s501_s6, %s810_s9  ;;  %p818_p13 = scmp.lt.s32.totalorder %s810_s9, %s810_s9 }
 0x2c9   : > { %p812_p10 = pnand %p811_p9, %p1119_p7  ;;  %p819_p8 = por %p818_p13, %p817_p11 }
 0x2cb   : > { %p813_p0 = pneg %p812_p10 }
 0x2cd   : > { %p820_p1 = pnand %p819_p8, %p813_p0 }
 0x2cf   : > { %823 = shalt.err (!%p820_p1)
}
 0x2d0   : > { %s824_s24 = scalar_lea.hbm %s1168_s5, 32 }
 0x2d1   : > { %p825_p2 = scmp.ne.s32.totalorder %s1168_s5, %s824_s24  ;;  %p830_p4 = scmp.lt.u32.totalorder %s824_s24, %s1168_s5 }
 0x2d3   : > { %p826_p6 = pnand %p825_p2, %p1119_p7 }
 0x2d5   : > { %p827_p12 = pneg %p826_p6 }
 0x2d7   : > { %p832_p3 = pnand %p830_p4, %p827_p12 }
 0x2d9   : > { %835 = shalt.err (!%p832_p3)
}
 0x2da   : > { %644 = dma.vmem_to_hbm [thread:$0]  (%p1119_p7), %s501_s6, 32, %s1168_s5, [#allocation5]  }
 0x2db   : > { %869 = dma.done.wait (%p1119_p7), [#allocation5], 32  }
 0x2dc   : > { %871 = vsyncadd (%p1119_p7), [#allocation5], 4294967264 }
 0x2dd PF: > { %s20_s23 = sadd.s32 1, %s894_s23   ;;  %s1184_s18 = smov %s878_s19 }
 0x2de   : > { %p17_p5 = scmp.ge.s32.totalorder %s20_s23, 4   ;;  %s1185_s19 = smov %s882_s20 }
 0x2df   : > { %s1186_s20 = smov %s1064_s17  ;;  %s1187_s21 = smov %s890_s22 }
 0x2e0   : > { %s1188_s22 = smov %s1190_s10  ;;  %19 = sbr.rel (!%p17_p5) target bundleno = 6 (0x6), region = 94 }
 0x2e7   :  { %513 = vsyncpa [#allocation4], 1 }
 0x2e8   :  { %515 = vsyncpa [#allocation4 + $0x1], 1 }
 0x2e9   :  { %516 = vsyncpa [#allocation7], 1 }
 0x2ea   :  { %517 = vsyncpa [#allocation5], 1 }
 0x2eb   :  { %519 = vsyncpa [#allocation5 + $0x1], 1 }

// kernel: tpu_custom_call.1
= control target key start
LH: loop header
LB: loop body
LE: loop exit
PB: predicated region body
PF: predicated region fallthrough
CT: control target
= control target key end

     0   :  { %10 = vsyncpa [#allocation4], 0  ;;  %s1163_s0 = inlined_call_operand.hbm [shape: f32[2,4,256], index: 0, kind: input, shape index: {}]   ;;  %s1164_s1 = inlined_call_operand.hbm [shape: f32[4,32], index: 1, kind: input, shape index: {}]   ;;  %s1165_s2 = inlined_call_operand.vmem [shape: f32[1,32], index: 2, kind: input, shape index: {}]   ;;  %s1166_s3 = inlined_call_operand.hbm [shape: f32[32,128], index: 3, kind: input, shape index: {}]   ;;  %s1167_s4 = inlined_call_operand.vmem [shape: f32[1,128], index: 4, kind: input, shape index: {}]   ;;  %s1168_s5 = inlined_call_operand.hbm [shape: f32[2,128], index: 5, kind: output, shape index: {}]  }
   0x1   :  { %12 = vsyncpa [#allocation4 + $0x1], 0 }
   0x2   :  { %13 = vsyncpa [#allocation7], 0 }
   0x3   :  { %14 = vsyncpa [#allocation5], 0  ;;  %s938_s18 = smov 0   ;;  %s940_s19 = smov 0  }
   0x4   :  { %s942_s20 = smov 0   ;;  %s944_s21 = smov 0  }
   0x5   :  { %s946_s22 = smov 0   ;;  %s948_s23 = smov 0  }
   0x6 LB: > { %s582_s24 = sadd.s32 4294967295, %s894_s23   ;;  %s41_s25 = sadd.s32 1, %s882_s20  ;;  %s894_s23 = sphi %s948_s23, %s20_s23   ;;  %s890_s22 = sphi %s946_s22, %s1188_s22   ;;  %s886_s21 = sphi %s944_s21, %s1187_s21   ;;  %s882_s20 = sphi %s942_s20, %s1186_s20   ;;  %s878_s19 = sphi %s940_s19, %s1185_s19   ;;  %s874_s18 = sphi %s938_s18, %s1184_s18  }
   0x7   : > { %p48_p0 = scmp.ne.s32.totalorder %s882_s20, %s878_s19  ;;  %p49_p1 = scmp.eq.s32.totalorder %s894_s23, 0 }
   0x8   : > { %p54_p2 = scmp.ne.s32.totalorder %s878_s19, %s874_s18  ;;  %p974_p3 = scmp.eq.s32.totalorder %s582_s24, 0 }
   0x9   : > { %p50_p4 = por %p49_p1, %p48_p0  ;;  %p583_p5 = scmp.ge.s32.totalorder %s894_s23, 1 }
   0xa   : > { %s1174_s26 = scalar_select %p974_p3, 1, 0 }
   0xb   : > { %p981_p6 = por %p974_p3, %p54_p2  ;;  %p175_p7 = scmp.lt.s32.totalorder %s894_s23, 3 }
   0xc   : > { %s896_s29 = smov [#allocation6]   ;;  %p660_p10 = scmp.lt.s32.totalorder %s894_s23, 2 }
   0xd   : > { %s1175_s27 = scalar_select %p981_p6, 1, 0 }
   0xe   : > { %p986_p8 = pnand %p583_p5, %p175_p7  ;;  %s188_s30 = sshll.u32 %s896_s29, 4  ;;  %s189_s30 = int_to_ptr.vmem [resolvable:$true] %s188_s30 }
   0xf   : > { %p999_p12 = pnand %p660_p10, %p50_p4  ;;  %s897_s8 = smov [#allocation8]  }
  0x10   : > { %s1176_s28 = scalar_select %p986_p8, 1, 0 }
  0x11   : > { %p647_p9 = pneg %p986_p8  ;;  %s201_s9 = sshll.u32 %s897_s8, 4  ;;  %s202_s9 = int_to_ptr.vmem [resolvable:$true] %s201_s9 }
  0x12   : > { %s1178_s7 = scalar_select %p999_p12, 1, 0 }
  0x13   : > { %p995_p11 = pnand %p647_p9, %p974_p3  ;;  %s724_s12 = scalar_lea.hbm %s1164_s1, 64 }
  0x14   : > { %p725_p13 = scmp.ne.s32.totalorder %s1164_s1, %s724_s12  ;;  %p731_p4 = scmp.lt.u32.totalorder %s724_s12, %s1164_s1 }
  0x15   : > { %p726_p0 = pneg %p995_p11 }
  0x17   : > { %p727_p1 = pnand %p726_p0, %p725_p13 }
  0x19   : > { %p728_p2 = pneg %p727_p1 }
  0x1b   : > { %p733_p5 = pnand %p731_p4, %p728_p2 }
  0x1d   : > { %736 = shalt.err (!%p733_p5)
}
  0x1e   : > { %s737_s17 = scalar_lea.vmem %s189_s30, 64  ;;  %p745_p3 = scmp.lt.s32.totalorder %s189_s30, %s189_s30 }
  0x1f   : > { %p738_p7 = scmp.ne.s32.totalorder %s189_s30, %s737_s17  ;;  %p746_p6 = scmp.lt.s32.totalorder %s737_s17, %s737_s17 }
  0x21   : > { %p740_p9 = pnand %p738_p7, %p726_p0  ;;  %p747_p8 = por %p746_p6, %p745_p3 }
  0x23   : > { %p741_p10 = pneg %p740_p9 }
  0x25   : > { %p748_p12 = pnand %p747_p8, %p741_p10 }
  0x27   : > { %751 = shalt.err (!%p748_p12)
}
  0x28   : > { %650 = dma.hbm_to_vmem [thread:$0]  (!%p995_p11), %s1164_s1, 64, %s189_s30, [#allocation7]  }
  0x29   : > { %s752_s11 = scalar_lea.hbm %s1166_s3, 512 }
  0x2a   : > { %p753_p13 = scmp.ne.s32.totalorder %s1166_s3, %s752_s11  ;;  %p759_p8 = scmp.lt.u32.totalorder %s752_s11, %s1166_s3 }
  0x2c   : > { %p755_p3 = pnand %p753_p13, %p726_p0 }
  0x2e   : > { %p756_p6 = pneg %p755_p3 }
  0x30   : > { %p761_p12 = pnand %p759_p8, %p756_p6 }
  0x32   : > { %764 = shalt.err (!%p761_p12)
}
  0x33   : > { %s765_s30 = scalar_lea.vmem %s202_s9, 512  ;;  %p773_p5 = scmp.lt.s32.totalorder %s202_s9, %s202_s9 }
  0x34   : > { %p766_p1 = scmp.ne.s32.totalorder %s202_s9, %s765_s30  ;;  %p774_p7 = scmp.lt.s32.totalorder %s765_s30, %s765_s30 }
  0x36   : > { %p768_p2 = pnand %p766_p1, %p726_p0  ;;  %p775_p9 = por %p774_p7, %p773_p5 }
  0x38   : > { %p769_p4 = pneg %p768_p2 }
  0x3a   : > { %p776_p10 = pnand %p775_p9, %p769_p4 }
  0x3c   : > { %779 = shalt.err (!%p776_p10)
}
  0x3d   : > { %s898_s16 = smov 128   ;;  %s899_s17 = smov 8  }
  0x3e   : > { %653 = dma.hbm_to_vmem [thread:$0]  (!%p995_p11), %s1166_s3, 512, %s202_s9, [#allocation7], %s898_s16, %s898_s16, %s899_s17  }
  0x3f   : > { %s218_s8 = sand.u32 1, %s882_s20   ;;  %s29_s10 = sadd.s32 1, %s890_s22 }
  0x40   : > { %p30_p0 = scmp.ge.s32.totalorder %s29_s10, 2  ;;  %s587_s11 = sshll.u32 %s218_s8, 3 }
  0x41   : > { %s588_s12 = sshll.u32 %s890_s22, 6  ;;  %s222_s15 = scalar_lea.vmem [#allocation3], %s587_s11 }
  0x42   : > { %s1190_s10 = smov (%p30_p0, %s29_s10), 0  ;;  %s1055_s6 = scalar_lea.hbm %s1163_s0, %s588_s12 }
  0x43   : > { %s231_s9 = sshll.u32 %s222_s15, 4  ;;  %s37_s30 = ssub.s32 %s890_s22, %s1190_s10  ;;  %s1059_s9 = int_to_ptr.vmem [resolvable:$true] %s231_s9 }
  0x44   : > { %p39_p11 = scmp.eq.s32.totalorder %s37_s30, 0  ;;  %s1066_s18 = scalar_lea.sflag [#allocation4], %s218_s8 }
  0x45   : > { %s780_s29 = scalar_lea.hbm %s1055_s6, 128  ;;  %p1179_p3 = scmp.ne.s32.totalorder %s1178_s7, 0 }
  0x46   : > { %s1064_s17 = scalar_select %p39_p11, %s882_s20, %s41_s25  }
  0x47   : > { %p781_p13 = scmp.ne.s32.totalorder %s1055_s6, %s780_s29  ;;  %p782_p6 = pneg %p1179_p3 }
  0x48   : > { %s785_s13 = scalar_lea.hbm %s1163_s0, 256  ;;  %p786_p1 = scmp.lt.u32.totalorder %s1055_s6, %s1163_s0 }
  0x49   : > { %p783_p8 = pnand %p782_p6, %p781_p13  ;;  %p787_p2 = scmp.lt.u32.totalorder %s785_s13, %s780_s29 }
  0x4a   : > { %p789_p5 = scmp.lt.u32.totalorder %s780_s29, %s1055_s6 }
  0x4b   : > { %p784_p12 = pneg %p783_p8  ;;  %p788_p4 = por %p787_p2, %p786_p1 }
  0x4d   : > { %p790_p7 = por %p789_p5, %p788_p4 }
  0x4f   : > { %p791_p9 = pnand %p790_p7, %p784_p12 }
  0x51   : > { %794 = shalt.err (!%p791_p9)
}
  0x52   : > { %s795_s25 = scalar_lea.vmem %s1059_s9, 128  ;;  %s900_s8 = smov [#allocation3]  }
  0x53   : > { %p796_p10 = scmp.ne.s32.totalorder %s1059_s9, %s795_s25  ;;  %s800_s30 = sshll.u32 %s900_s8, 4  ;;  %s801_s30 = int_to_ptr.vmem [resolvable:$false] %s800_s30 }
  0x54   : > { %s802_s11 = scalar_lea.vmem %s801_s30, 256  ;;  %p803_p13 = scmp.lt.s32.totalorder %s1059_s9, %s801_s30 }
  0x55   : > { %p798_p0 = pnand %p796_p10, %p782_p6  ;;  %p804_p8 = scmp.lt.s32.totalorder %s802_s11, %s795_s25 }
  0x57   : > { %p799_p11 = pneg %p798_p0  ;;  %p805_p1 = por %p804_p8, %p803_p13 }
  0x59   : > { %p806_p2 = pnand %p805_p1, %p799_p11 }
  0x5b   : > { %809 = shalt.err (!%p806_p2)
}
  0x5c   : > { %s901_s29 = smov 64   ;;  %s902_s12 = smov 4  }
  0x5d   : > { %657 = dma.hbm_to_vmem [thread:$0]  (!%p1179_p3), %s1055_s6, 128, %s1059_s9, %s1066_s18, %s898_s16, %s901_s29, %s902_s12  }
  0x5e   : > { %p1180_p6 = scmp.ne.s32.totalorder %s1176_s28, 0 }
  0x5f   : > { %s245_s13 = sand.u32 (!%p1180_p6), 1, %s878_s19   ;;  %p1181_p12 = scmp.ne.s32.totalorder (!%p1180_p6), %s1175_s27, 0 }
  0x60   : > { %243 = sbr.rel (%p1180_p6) target bundleno = 733 (0x2dd), region = 40  ;;  %s590_s14 = sshll.u32 (!%p1180_p6), %s245_s13, 3 }
  0x61   : > { %s246_s15 = scalar_lea.sflag (!%p1180_p6), [#allocation4], %s245_s13  ;;  %s249_s25 = scalar_lea.vmem (!%p1180_p6), [#allocation3], %s590_s14 }
  0x67   : > { %861 = dma.done.wait (%p1181_p12), %s246_s15, 128  }
  0x68   : > { %863 = vsyncadd (%p1181_p12), %s246_s15, 4294967168  ;;  %p1182_p4 = scmp.ne.s32.totalorder %s1174_s26, 0 }
  0x6a   : > { %865 = dma.done.wait (%p1182_p4), [#allocation7], 576  }
  0x6b   : > { %867 = vsyncadd (%p1182_p4), [#allocation7], 4294966720  ;;  %p593_p3 = scmp.ne.s32.totalorder %s886_s21, 0 }
  0x6c   : > { %vm284_vm0 = vcmask (!%p593_p3), 25600   ;;  %v903_v0 = vmov (!%p593_p3), 0.0  }
  0x6d   : > { %283 = sbr.rel (%p593_p3) target bundleno = 116 (0x74), region = 56  ;;  %285 = vst.msk [vmem:[#allocation2] sm:$0x3] (!%p593_p3), %vm284_vm0, %v903_v0 }
  0x74 PF: > { %v286_v1 = vld [vmem:[%s249_s25] sm:$0xf]  ;;  %vm289_vm1 = vcmask 1043456   ;;  %v287_v2 = vld [vmem:[%s249_s25 + $0x4] sm:$0xf]  ;;  %v298_v5 = vlaneseq  ;;  %vm308_vm2 = vcmask 1041409  }
  0x75   : > { %v290_v3 = vsel %vm289_vm1, %v286_v1, 0.0  ;;  %v293_v4 = vsel %vm289_vm1, %v287_v2, 0.0  ;;  %v288_v12 = vld [vmem:[#allocation2] sm:$0x3]  ;;  %vm312_vm3 = vcmask 25600   ;;  %p594_p5 = scmp.ne.s32.totalorder %s886_s21, 1 }
  0x76   : > { %291 = vadd.xlane.f32.xlu0 %v290_v3  ;;  %v299_v6 = vand.u32 127, %v298_v5  ;;  %v301_v7 = vshrl.u32 %v298_v5, 7  ;;  %v319_v16 = vld [vmem:[#allocation6] sm:$0xf] (!%p594_p5)  ;;  %v904_v18 = vmov (!%p594_p5), 0.0   ;;  %vm905_vm4 = vmmov (!%p594_p5), 0  }
  0x77   : > { %611 = vmatprep.subr.mxu0 (!%p594_p5), %v904_v18  ;;  %613 = vmatprep.mubr.msk.f32.mxu0 (!%p594_p5), %vm905_vm4, %v904_v18  ;;  %vm327_vm5 = vcmask (!%p594_p5), 31744   ;;  %v405_v19 = vld [vmem:[#allocation8] sm:$0xff] (!%p594_p5)  ;;  %v406_v20 = vld [vmem:[#allocation8 + $0x8] sm:$0xff] (!%p594_p5)  ;;  %v906_v21 = vmov (!%p594_p5), 0.0|0.0   ;;  %v407_v23 = vld [vmem:[#allocation8 + $0x10] sm:$0xff] (!%p594_p5)  ;;  %vm416_vm6 = vcmask (!%p594_p5), 261120  }
  0x78   : > { %v302_v9 = vsub.s32 %v299_v6, %v301_v7  ;;  %612 = vmatpush3.msk.msra.mxu0 (!%p594_p5), %vm289_vm1, %v319_v16  ;;  %627 = vmatprep.subr.bf16.mxu1 (!%p594_p5), %v906_v21  ;;  %v628_v22 = vpack.c.bf16 (!%p594_p5), %v406_v20, %v405_v19  ;;  %v408_v24 = vld [vmem:[#allocation8 + $0x18] sm:$0xff] (!%p594_p5)  ;;  %v595_v26 = vld [vmem:[%s1165_s2] ss:$0 sm:$0xff] (!%p594_p5) }
  0x79   : > { %624 = vmatprep.mubr.msk.f32.mxu1 (!%p594_p5), %vm905_vm4, %v904_v18  ;;  %v631_v25 = vpack.c.bf16 (!%p594_p5), %v408_v24, %v407_v23  ;;  %v598_v31 = vld [vmem:[%s1167_s4] ss:$0 sm:$0xff] (!%p594_p5) }
  0x7a   : > { %294 = vadd.xlane.f32.xlu0 %v293_v4  ;;  %629 = vmatpush3.bf16.msra.mxu1 (!%p594_p5), %v628_v22 }
  0x7b   : > { %630 = vmatprep.subr.bf16.mxu1 (!%p594_p5), %v906_v21 }
  0x7e   : > { %632 = vmatpush3.bf16.msra.mxu1 (!%p594_p5), %v631_v25 }
 0x103   : > { %v292_v8 = vpop.xlane.xlu0 %291 }
 0x104   : > { %v303_v11 = vrot.slane %v292_v8, %v302_v9 }
 0x107   : > { %v295_v10 = vpop.xlane.xlu0 %294  ;;  %317 = sbr.rel (%p594_p5) target bundleno = 708 (0x2c4), region = 60 }
 0x108   : > { %v307_v13 = vrot.slane %v295_v10, %v302_v9 }
 0x10a   : > { %v309_v14 = vsel %vm308_vm2, %v307_v13, %v303_v11 }
 0x10b   : > { %v311_v15 = vadd.f32 %v309_v14, %v288_v12 }
 0x10d   : > { %313 = vst.msk [vmem:[#allocation2] sm:$0x3] %vm312_vm3, %v311_v15 }
 0x114   : > { %v318_v17 = vld [vmem:[#allocation2] sm:$0x3] }
 0x115   : > { %614 = vmatmul.mubr.msk.f32.vlgmr.msra.gmra.mrb[0].mxu0 %vm327_vm5, %v318_v17 }
 0x1e8   : > { %v400_v27 = vpop.f32.mrb[0].mxu0 }
 0x1e9   : > { %v401_v28 = vadd.f32 %v595_v26, %v400_v27  ;;  %v615_v29 = vpop.f32.mrb[1].mxu0 }
 0x1eb   : > { %v404_v30 = vmax.f32 %v401_v28, 0.0 }
 0x1ed   : > { %625 = vmatmul.mubr.msk.f32.vlgmr.msra.gmra.mrb[0].mxu1 %vm416_vm6, %v404_v30 }
 0x2c0   : > { %v486_v32 = vpop.f32.mrb[0].mxu1 }
 0x2c1   : > { %v487_v33 = vadd.f32 %v598_v31, %v486_v32  ;;  %v626_v34 = vpop.f32.mrb[1].mxu1 }
 0x2c3   : > { %490 = vst [vmem:[#allocation9] sm:$0x3] %v487_v33 }
 0x2c4 PF: > { %p1119_p7 = scmp.eq.s32.totalorder %s582_s24, 1  ;;  %s907_s16 = smov [#allocation9]  }
 0x2c5   : > { %s500_s6 = sshll.u32 %s907_s16, 4  ;;  %s501_s6 = int_to_ptr.vmem [resolvable:$true] %s500_s6 }
 0x2c6   : > { %s810_s9 = scalar_lea.vmem %s501_s6, 32  ;;  %p817_p11 = scmp.lt.s32.totalorder %s501_s6, %s501_s6 }
 0x2c7   : > { %p811_p9 = scmp.ne.s32.totalorder %s501_s6, %s810_s9  ;;  %p818_p13 = scmp.lt.s32.totalorder %s810_s9, %s810_s9 }
 0x2c9   : > { %p812_p10 = pnand %p811_p9, %p1119_p7  ;;  %p819_p8 = por %p818_p13, %p817_p11 }
 0x2cb   : > { %p813_p0 = pneg %p812_p10 }
 0x2cd   : > { %p820_p1 = pnand %p819_p8, %p813_p0 }
 0x2cf   : > { %823 = shalt.err (!%p820_p1)
}
 0x2d0   : > { %s824_s24 = scalar_lea.hbm %s1168_s5, 32 }
 0x2d1   : > { %p825_p2 = scmp.ne.s32.totalorder %s1168_s5, %s824_s24  ;;  %p830_p4 = scmp.lt.u32.totalorder %s824_s24, %s1168_s5 }
 0x2d3   : > { %p826_p6 = pnand %p825_p2, %p1119_p7 }
 0x2d5   : > { %p827_p12 = pneg %p826_p6 }
 0x2d7   : > { %p832_p3 = pnand %p830_p4, %p827_p12 }
 0x2d9   : > { %835 = shalt.err (!%p832_p3)
}
 0x2da   : > { %644 = dma.vmem_to_hbm [thread:$0]  (%p1119_p7), %s501_s6, 32, %s1168_s5, [#allocation5]  }
 0x2db   : > { %869 = dma.done.wait (%p1119_p7), [#allocation5], 32  }
 0x2dc   : > { %871 = vsyncadd (%p1119_p7), [#allocation5], 4294967264 }
 0x2dd PF: > { %s20_s23 = sadd.s32 1, %s894_s23   ;;  %s1184_s18 = smov %s878_s19 }
 0x2de   : > { %p17_p5 = scmp.ge.s32.totalorder %s20_s23, 4   ;;  %s1185_s19 = smov %s882_s20 }
 0x2df   : > { %s1186_s20 = smov %s1064_s17  ;;  %s1187_s21 = smov %s890_s22 }
 0x2e0   : > { %s1188_s22 = smov %s1190_s10  ;;  %19 = sbr.rel (!%p17_p5) target bundleno = 6 (0x6), region = 94 }
 0x2e7   :  { %513 = vsyncpa [#allocation4], 1 }
 0x2e8   :  { %515 = vsyncpa [#allocation4 + $0x1], 1 }
 0x2e9   :  { %516 = vsyncpa [#allocation7], 1 }
 0x2ea   :  { %517 = vsyncpa [#allocation5], 1 }
 0x2eb   :  { %519 = vsyncpa [#allocation5 + $0x1], 1 }

</bundles_post_ra>
